<compile_context>
chip_gen: v6e
topology: v6e:2x2x1
jax: 0.10.0
libtpu: 0.0.40
codegen_flags: <defaults>
</compile_context>

<pallas_src>
import math
from functools import partial

import numpy as np
import jax
import jax.numpy as jnp
from jax.experimental import pallas as pl
from jax.experimental.pallas import tpu as pltpu

D_MODEL = 64
N_HEADS = 2
HEAD_DIM = D_MODEL // N_HEADS
D_FF = 64
D_CLS = 32
NC_PAD = 128          # lane-dense logits slab
LN_EPS = 1e-5
TARGET_ROWS = 256     # merged rows per grid step (caps the (rows,rows) score tile)

# Rows of the consolidated (9, 64) bias / LayerNorm-vector slab.
(R_BE, R_BO, R_G1, R_B1, R_G2, R_B2, R_BF1, R_BF2, R_BC1) = range(9)


def _layer_norm(x, gamma, beta):
    mu = jnp.mean(x, axis=-1, keepdims=True)
    var = jnp.mean((x - mu) ** 2, axis=-1, keepdims=True)
    return (x - mu) * jax.lax.rsqrt(var + LN_EPS) * gamma + beta


def _emg_kernel(x_ref, we_ref, wqkv_ref, wo_ref, wf1_ref, wf2_ref, wc1_ref,
                wc2_ref, bqkv_ref, bc2_ref, vec_ref, mask_ref, pool_ref,
                out_ref, *, compute_dtype):
    bt, S, F = x_ref.shape
    rows = bt * S

    def mm(a, b):
        # Matmul operands in bf16, accumulation in f32.
        return jnp.dot(a.astype(compute_dtype), b.astype(compute_dtype),
                       preferred_element_type=jnp.float32)

    def vrow(r):
        return vec_ref[r:r + 1, :]          # (1, 64) — broadcasts over rows

    # Merge (batch-tile, seq) so every dense matmul has M = bt*S rows.
    x = x_ref[...].reshape(rows, F)         # already bf16 (cast in the wrapper)

    # --- embedding: Linear(input_dim -> 64) ---
    emb = mm(x, we_ref[...]) + vrow(R_BE)                               # (rows, 64)

    # --- fused QKV projection (1/sqrt(head_dim) folded into Q weights/bias),
    #     single lane-dense (1, 192) bias add ---
    qkv = mm(emb, wqkv_ref[...]) + bqkv_ref[...]                        # (rows, 192)

    # --- block-diagonal masked attention; scores are lane-dense (rows, rows) ---
    neg = mask_ref[...]                                                 # (rows, rows)
    attn = vrow(R_BO)                                                   # start from out-proj bias
    for h in range(N_HEADS):
        o_q = h * HEAD_DIM
        o_k = D_MODEL + h * HEAD_DIM
        o_v = 2 * D_MODEL + h * HEAD_DIM
        q = qkv[:, o_q:o_q + HEAD_DIM]                                  # (rows, 32)
        k = qkv[:, o_k:o_k + HEAD_DIM]
        v = qkv[:, o_v:o_v + HEAD_DIM]
        s = jnp.einsum("rd,cd->rc", q.astype(compute_dtype), k.astype(compute_dtype),
                       preferred_element_type=jnp.float32) + neg        # (rows, rows)
        s = s - jnp.max(s, axis=-1, keepdims=True)
        p = jnp.exp(s)                                                  # masked entries -> exactly 0
        p = p * pl.reciprocal(jnp.sum(p, axis=-1, keepdims=True), approx=True)
        o = mm(p, v)                                                    # (rows, 32)
        # Per-head out-projection: no concat / reshape relayout.
        attn = attn + mm(o, wo_ref[h * HEAD_DIM:(h + 1) * HEAD_DIM, :]) # (rows, 64)
    # TODO(synk): attention / residual / FFN / classifier dropout (p=0.5) omitted
    # (eval-mode identity).

    # --- post-norm encoder layer: residual + LN, FFN, residual + LN ---
    h1 = _layer_norm(emb + attn, vrow(R_G1), vrow(R_B1))
    ff = jnp.maximum(mm(h1, wf1_ref[...]) + vrow(R_BF1), 0.0)
    ff = mm(ff, wf2_ref[...]) + vrow(R_BF2)
    h2 = _layer_norm(h1 + ff, vrow(R_G2), vrow(R_B2))

    # --- per-sample mean-pool over the sequence as one tiny MXU pass ---
    pooled = mm(pool_ref[...], h2) * (1.0 / S)                          # (bt, 64)

    # --- classifier head (hidden padded 32->64, classes padded to 128 lanes) ---
    c = jnp.maximum(mm(pooled, wc1_ref[...]) + vrow(R_BC1), 0.0)
    out_ref[0] = mm(c, wc2_ref[...]) + bc2_ref[...]                     # (bt, 128) f32


def _pack_kernel_params(w, nc, bt, S, compute_dtype):
    """Re-layout PyTorch-style weights into kernel-friendly, lane-aligned refs."""
    d = D_MODEL
    scale = 1.0 / math.sqrt(HEAD_DIM)
    in_w, in_b = w["in_proj_w"], w["in_proj_b"]
    wq, wk, wv = in_w[:d] * scale, in_w[d:2 * d], in_w[2 * d:]
    b_qkv = jnp.concatenate([in_b[:d] * scale, in_b[d:2 * d], in_b[2 * d:]])[None, :]

    w_emb = w["emb_w"].T.astype(compute_dtype)                                  # (F, 64)
    w_qkv = jnp.concatenate([wq.T, wk.T, wv.T], axis=1).astype(compute_dtype)   # (64, 192)
    w_o = w["out_proj_w"].T.astype(compute_dtype)                               # (64, 64)
    w_ff1 = w["ff1_w"].T.astype(compute_dtype)                                  # (64, 64)
    w_ff2 = w["ff2_w"].T.astype(compute_dtype)                                  # (64, 64)
    w_c1 = (jnp.zeros((d, d), jnp.float32).at[:, :D_CLS].set(w["c1_w"].T)
            .astype(compute_dtype))                                             # (64, 64)
    w_c2 = (jnp.zeros((d, NC_PAD), jnp.float32).at[:D_CLS, :nc].set(w["c2_w"].T)
            .astype(compute_dtype))                                             # (64, 128)
    b_c2 = jnp.zeros((1, NC_PAD), jnp.float32).at[0, :nc].set(w["c2_b"])        # (1, 128)

    bc1_pad = jnp.zeros((d,), jnp.float32).at[:D_CLS].set(w["c1_b"])
    vec = jnp.stack([
        w["emb_b"], w["out_proj_b"],
        w["ln1_w"], w["ln1_b"], w["ln2_w"], w["ln2_b"],
        w["ff1_b"], w["ff2_b"], bc1_pad,
    ], axis=0)                                                                  # (9, 64)

    rows = bt * S
    sid = jnp.arange(rows, dtype=jnp.int32) // S
    mask = jnp.where(sid[:, None] == sid[None, :], 0.0, -1e30).astype(jnp.float32)  # (rows, rows)
    # 0/1 block-pooling matrix (exact in bf16); the 1/S scale is applied in f32 in-kernel.
    pool = jnp.repeat(jnp.eye(bt, dtype=jnp.float32), S, axis=1).astype(compute_dtype)  # (bt, rows)

    return (w_emb, w_qkv, w_o, w_ff1, w_ff2, w_c1, w_c2, b_qkv, b_c2, vec, mask, pool)


def emg_transformer_forward(x, torch_style_weights):
    B, S, F = x.shape
    nc = torch_style_weights["c2_w"].shape[0]
    assert nc <= NC_PAD
    # bf16 MXU operands on every TPU generation (the MXU is natively bf16 even on v5e);
    # accumulation and all elementwise math stay f32.
    compute_dtype = jnp.bfloat16

    # --- batch-tile selection: ~256 merged rows, sublane-aligned, never pad a full tile ---
    bt = max(1, TARGET_ROWS // S)
    if bt > 8:
        bt = (bt // 8) * 8
    bt = min(bt, B)
    # v7x has 2 TensorCores; ensure the parallel grid axis has >= 2 tiles when possible.
    kind = ""
    try:
        kind = jax.devices()[0].device_kind.lower()
    except Exception:
        pass
    if "v7" in kind and B >= 2 and int(pl.cdiv(B, bt)) < 2:
        bt = int(pl.cdiv(B, 2))

    Bp = int(pl.cdiv(B, bt)) * bt
    n_tiles = Bp // bt

    # bf16 input halves the only per-step HBM->VMEM stream.
    x = x.astype(compute_dtype)
    if Bp != B:
        x = jnp.concatenate([x, jnp.zeros((Bp - B, S, F), x.dtype)], axis=0)

    params = _pack_kernel_params(torch_style_weights, nc, bt, S, compute_dtype)

    def const_spec(a):
        zeros = (0,) * a.ndim
        return pl.BlockSpec(a.shape, lambda i, _z=zeros: _z)

    out = pl.pallas_call(
        partial(_emg_kernel, compute_dtype=compute_dtype),
        out_shape=jax.ShapeDtypeStruct((n_tiles, bt, NC_PAD), jnp.float32),
        grid=(n_tiles,),
        in_specs=[pl.BlockSpec((bt, S, F), lambda i: (i, 0, 0))]
                 + [const_spec(a) for a in params],
        out_specs=pl.BlockSpec((1, bt, NC_PAD), lambda i: (i, 0, 0)),
        compiler_params=pltpu.CompilerParams(dimension_semantics=("parallel",)),
    )(x, *params)

    return out.reshape(Bp, NC_PAD)[:B, :nc]


# ------------------------- pure-JAX reference (eval mode) -------------------------
def _reference(x, w):
    B, S, _ = x.shape
    emb = x @ w["emb_w"].T + w["emb_b"]
    qkv = emb @ w["in_proj_w"].T + w["in_proj_b"]
    q, k, v = qkv[..., :D_MODEL], qkv[..., D_MODEL:2 * D_MODEL], qkv[..., 2 * D_MODEL:]

    def heads(t):
        return t.reshape(B, S, N_HEADS, HEAD_DIM).transpose(0, 2, 1, 3)

    q, k, v = heads(q), heads(k), heads(v)
    s = jnp.einsum("bhqd,bhkd->bhqk", q, k) / math.sqrt(HEAD_DIM)
    pattn = jax.nn.softmax(s, axis=-1)
    o = jnp.einsum("bhqk,bhkd->bhqd", pattn, v).transpose(0, 2, 1, 3).reshape(B, S, D_MODEL)
    o = o @ w["out_proj_w"].T + w["out_proj_b"]
    h1 = _layer_norm(emb + o, w["ln1_w"], w["ln1_b"])
    ff = jax.nn.relu(h1 @ w["ff1_w"].T + w["ff1_b"]) @ w["ff2_w"].T + w["ff2_b"]
    h2 = _layer_norm(h1 + ff, w["ln2_w"], w["ln2_b"])
    pooled = h2.mean(axis=1)
    c = jax.nn.relu(pooled @ w["c1_w"].T + w["c1_b"])
    return c @ w["c2_w"].T + w["c2_b"]


def _make_weights(key, input_dim, num_classes):
    ks = jax.random.split(key, 18)
    d = D_MODEL

    def rnd(k, shape, scale):
        return (jax.random.normal(k, shape, dtype=jnp.float32) * scale).astype(jnp.float32)

    return {
        "emb_w": rnd(ks[0], (d, input_dim), 1.0 / math.sqrt(input_dim)),
        "emb_b": rnd(ks[1], (d,), 0.02),
        "in_proj_w": rnd(ks[2], (3 * d, d), 1.0 / math.sqrt(d)),
        "in_proj_b": rnd(ks[3], (3 * d,), 0.02),
        "out_proj_w": rnd(ks[4], (d, d), 1.0 / math.sqrt(d)),
        "out_proj_b": rnd(ks[5], (d,), 0.02),
        "ln1_w": 1.0 + rnd(ks[6], (d,), 0.05),
        "ln1_b": rnd(ks[7], (d,), 0.05),
        "ln2_w": 1.0 + rnd(ks[8], (d,), 0.05),
        "ln2_b": rnd(ks[9], (d,), 0.05),
        "ff1_w": rnd(ks[10], (D_FF, d), 1.0 / math.sqrt(d)),
        "ff1_b": rnd(ks[11], (D_FF,), 0.02),
        "ff2_w": rnd(ks[12], (d, D_FF), 1.0 / math.sqrt(D_FF)),
        "ff2_b": rnd(ks[13], (d,), 0.02),
        "c1_w": rnd(ks[14], (D_CLS, d), 1.0 / math.sqrt(d)),
        "c1_b": rnd(ks[15], (D_CLS,), 0.02),
        "c2_w": rnd(ks[16], (num_classes, D_CLS), 1.0 / math.sqrt(D_CLS)),
        "c2_b": rnd(ks[17], (num_classes,), 0.02),
    }


if __name__ == "__main__":
    B, S, input_dim, num_classes = 2, 8, 16, 5
    key = jax.random.PRNGKey(0)
    kx, kw = jax.random.split(key)
    x = jax.random.normal(kx, (B, S, input_dim), dtype=jnp.float32)
    w = _make_weights(kw, input_dim, num_classes)

    out = jax.block_until_ready(emg_transformer_forward(x, w))
    ref = _reference(x, w)
    assert out.shape == (B, num_classes)

    # bf16 matmul operands (f32 accumulation / elementwise) on all TPU generations.
    np.testing.assert_allclose(np.asarray(out), np.asarray(ref), rtol=5e-2, atol=2e-2)
    print("KERNEL_OK")
</pallas_src>

<mosaic_0001>
module attributes {stable_mosaic.version = 11 : i64} {
  func.func @_emg_kernel(%arg0: i32, %arg1: memref<2x8x16xbf16, #tpu.memory_space<vmem>>, %arg2: memref<16x64xbf16, #tpu.memory_space<vmem>>, %arg3: memref<64x192xbf16, #tpu.memory_space<vmem>>, %arg4: memref<64x64xbf16, #tpu.memory_space<vmem>>, %arg5: memref<64x64xbf16, #tpu.memory_space<vmem>>, %arg6: memref<64x64xbf16, #tpu.memory_space<vmem>>, %arg7: memref<64x64xbf16, #tpu.memory_space<vmem>>, %arg8: memref<64x128xbf16, #tpu.memory_space<vmem>>, %arg9: memref<1x192xf32, #tpu.memory_space<vmem>>, %arg10: memref<1x128xf32, #tpu.memory_space<vmem>>, %arg11: memref<9x64xf32, #tpu.memory_space<vmem>>, %arg12: memref<16x16xf32, #tpu.memory_space<vmem>>, %arg13: memref<2x16xbf16, #tpu.memory_space<vmem>>, %arg14: memref<1x2x128xf32, #tpu.memory_space<vmem>>) attributes {dimension_semantics = [#tpu.dimension_semantics<parallel>], iteration_bounds = array<i64: 1>, scalar_prefetch = 0 : i64, scratch_operands = 0 : i64, tpu.core_type = #tpu.core_type<tc>, window_params = [{transform_indices = @transform_0, window_bounds = array<i64: 2, 8, 16>}, {pipeline_mode = #tpu.pipeline_mode<synchronous>, transform_indices = @transform_1, window_bounds = array<i64: 16, 64>}, {pipeline_mode = #tpu.pipeline_mode<synchronous>, transform_indices = @transform_2, window_bounds = array<i64: 64, 192>}, {pipeline_mode = #tpu.pipeline_mode<synchronous>, transform_indices = @transform_3, window_bounds = array<i64: 64, 64>}, {pipeline_mode = #tpu.pipeline_mode<synchronous>, transform_indices = @transform_4, window_bounds = array<i64: 64, 64>}, {pipeline_mode = #tpu.pipeline_mode<synchronous>, transform_indices = @transform_5, window_bounds = array<i64: 64, 64>}, {pipeline_mode = #tpu.pipeline_mode<synchronous>, transform_indices = @transform_6, window_bounds = array<i64: 64, 64>}, {pipeline_mode = #tpu.pipeline_mode<synchronous>, transform_indices = @transform_7, window_bounds = array<i64: 64, 128>}, {pipeline_mode = #tpu.pipeline_mode<synchronous>, transform_indices = @transform_8, window_bounds = array<i64: 1, 192>}, {pipeline_mode = #tpu.pipeline_mode<synchronous>, transform_indices = @transform_9, window_bounds = array<i64: 1, 128>}, {pipeline_mode = #tpu.pipeline_mode<synchronous>, transform_indices = @transform_10, window_bounds = array<i64: 9, 64>}, {pipeline_mode = #tpu.pipeline_mode<synchronous>, transform_indices = @transform_11, window_bounds = array<i64: 16, 16>}, {pipeline_mode = #tpu.pipeline_mode<synchronous>, transform_indices = @transform_12, window_bounds = array<i64: 2, 16>}, {transform_indices = @transform_13, window_bounds = array<i64: 1, 2, 128>}]} {
    %c0 = arith.constant 0 : index
    %c0_0 = arith.constant 0 : index
    %c0_1 = arith.constant 0 : index
    %0 = vector.load %arg1[%c0, %c0_0, %c0_1] : memref<2x8x16xbf16, #tpu.memory_space<vmem>>, vector<2x8x16xbf16>
    %1 = vector.shape_cast %0 : vector<2x8x16xbf16> to vector<16x16xbf16>
    %c0_2 = arith.constant 0 : index
    %c0_3 = arith.constant 0 : index
    %2 = vector.load %arg2[%c0_2, %c0_3] : memref<16x64xbf16, #tpu.memory_space<vmem>>, vector<16x64xbf16>
    %cst = arith.constant dense<0.000000e+00> : vector<16x64xf32>
    %3 = tpu.matmul %1, %2, %cst {dimension_numbers = #tpu.dot_dimension_numbers<[1], [0], [0], [1], [0, 0, 1, 1], [], []>} : vector<16x16xbf16>, vector<16x64xbf16>, vector<16x64xf32> -> vector<16x64xf32>
    %c0_4 = arith.constant 0 : index
    %c0_5 = arith.constant 0 : index
    %4 = vector.load %arg11[%c0_4, %c0_5] : memref<9x64xf32, #tpu.memory_space<vmem>>, vector<1x64xf32>
    %5 = vector.broadcast %4 : vector<1x64xf32> to vector<16x64xf32>
    %6 = arith.addf %3, %5 : vector<16x64xf32>
    %c0_6 = arith.constant 0 : index
    %c0_7 = arith.constant 0 : index
    %7 = vector.load %arg3[%c0_6, %c0_7] : memref<64x192xbf16, #tpu.memory_space<vmem>>, vector<64x192xbf16>
    %8 = arith.truncf %6 : vector<16x64xf32> to vector<16x64xbf16>
    %cst_8 = arith.constant dense<0.000000e+00> : vector<16x192xf32>
    %9 = tpu.matmul %8, %7, %cst_8 {dimension_numbers = #tpu.dot_dimension_numbers<[1], [0], [0], [1], [0, 0, 1, 1], [], []>} : vector<16x64xbf16>, vector<64x192xbf16>, vector<16x192xf32> -> vector<16x192xf32>
    %c0_9 = arith.constant 0 : index
    %c0_10 = arith.constant 0 : index
    %10 = vector.load %arg9[%c0_9, %c0_10] : memref<1x192xf32, #tpu.memory_space<vmem>>, vector<1x192xf32>
    %11 = vector.broadcast %10 : vector<1x192xf32> to vector<16x192xf32>
    %12 = arith.addf %9, %11 : vector<16x192xf32>
    %c0_11 = arith.constant 0 : index
    %c0_12 = arith.constant 0 : index
    %13 = vector.load %arg12[%c0_11, %c0_12] : memref<16x16xf32, #tpu.memory_space<vmem>>, vector<16x16xf32>
    %c1 = arith.constant 1 : index
    %c0_13 = arith.constant 0 : index
    %14 = vector.load %arg11[%c1, %c0_13] : memref<9x64xf32, #tpu.memory_space<vmem>>, vector<1x64xf32>
    %15 = vector.extract_strided_slice %12 {offsets = [0, 0], sizes = [16, 32], strides = [1, 1]} : vector<16x192xf32> to vector<16x32xf32>
    %16 = vector.extract_strided_slice %12 {offsets = [0, 64], sizes = [16, 32], strides = [1, 1]} : vector<16x192xf32> to vector<16x32xf32>
    %17 = vector.extract_strided_slice %12 {offsets = [0, 128], sizes = [16, 32], strides = [1, 1]} : vector<16x192xf32> to vector<16x32xf32>
    %18 = arith.truncf %15 : vector<16x32xf32> to vector<16x32xbf16>
    %19 = arith.truncf %16 : vector<16x32xf32> to vector<16x32xbf16>
    "tpu.trace_start"() <{level = 10 : i32, message = "rd,cd->rc"}> : () -> ()
    %cst_14 = arith.constant dense<0.000000e+00> : vector<16x16xf32>
    %20 = tpu.matmul %18, %19, %cst_14 {dimension_numbers = #tpu.dot_dimension_numbers<[1], [1], [0], [0], [0, 0, 1, 0], [], []>} : vector<16x32xbf16>, vector<16x32xbf16>, vector<16x16xf32> -> vector<16x16xf32>
    "tpu.trace_stop"() : () -> ()
    %21 = arith.addf %20, %13 : vector<16x16xf32>
    %cst_15 = arith.constant dense<0xFF800000> : vector<16xf32>
    %22 = vector.multi_reduction <maximumf>, %21, %cst_15 [1] : vector<16x16xf32> to vector<16xf32>
    %23 = vector.shape_cast %22 : vector<16xf32> to vector<16x1xf32>
    %24 = vector.broadcast %23 : vector<16x1xf32> to vector<16x16xf32>
    %25 = arith.subf %21, %24 : vector<16x16xf32>
    %26 = math.exp %25 : vector<16x16xf32>
    %cst_16 = arith.constant dense<0.000000e+00> : vector<16xf32>
    %27 = vector.multi_reduction <add>, %26, %cst_16 [1] : vector<16x16xf32> to vector<16xf32>
    %28 = vector.shape_cast %27 : vector<16xf32> to vector<16x1xf32>
    %29 = tpu.reciprocal %28 {approx = true} : vector<16x1xf32> -> vector<16x1xf32>
    %30 = vector.broadcast %29 : vector<16x1xf32> to vector<16x16xf32>
    %31 = arith.mulf %26, %30 : vector<16x16xf32>
    %32 = arith.truncf %31 : vector<16x16xf32> to vector<16x16xbf16>
    %33 = arith.truncf %17 : vector<16x32xf32> to vector<16x32xbf16>
    %cst_17 = arith.constant dense<0.000000e+00> : vector<16x32xf32>
    %34 = tpu.matmul %32, %33, %cst_17 {dimension_numbers = #tpu.dot_dimension_numbers<[1], [0], [0], [1], [0, 0, 1, 1], [], []>} : vector<16x16xbf16>, vector<16x32xbf16>, vector<16x32xf32> -> vector<16x32xf32>
    %c0_18 = arith.constant 0 : index
    %c0_19 = arith.constant 0 : index
    %35 = vector.load %arg4[%c0_18, %c0_19] : memref<64x64xbf16, #tpu.memory_space<vmem>>, vector<32x64xbf16>
    %36 = arith.truncf %34 : vector<16x32xf32> to vector<16x32xbf16>
    %cst_20 = arith.constant dense<0.000000e+00> : vector<16x64xf32>
    %37 = tpu.matmul %36, %35, %cst_20 {dimension_numbers = #tpu.dot_dimension_numbers<[1], [0], [0], [1], [0, 0, 1, 1], [], []>} : vector<16x32xbf16>, vector<32x64xbf16>, vector<16x64xf32> -> vector<16x64xf32>
    %38 = vector.broadcast %14 : vector<1x64xf32> to vector<16x64xf32>
    %39 = arith.addf %38, %37 : vector<16x64xf32>
    %40 = vector.extract_strided_slice %12 {offsets = [0, 32], sizes = [16, 32], strides = [1, 1]} : vector<16x192xf32> to vector<16x32xf32>
    %41 = vector.extract_strided_slice %12 {offsets = [0, 96], sizes = [16, 32], strides = [1, 1]} : vector<16x192xf32> to vector<16x32xf32>
    %42 = vector.extract_strided_slice %12 {offsets = [0, 160], sizes = [16, 32], strides = [1, 1]} : vector<16x192xf32> to vector<16x32xf32>
    %43 = arith.truncf %40 : vector<16x32xf32> to vector<16x32xbf16>
    %44 = arith.truncf %41 : vector<16x32xf32> to vector<16x32xbf16>
    "tpu.trace_start"() <{level = 10 : i32, message = "rd,cd->rc"}> : () -> ()
    %cst_21 = arith.constant dense<0.000000e+00> : vector<16x16xf32>
    %45 = tpu.matmul %43, %44, %cst_21 {dimension_numbers = #tpu.dot_dimension_numbers<[1], [1], [0], [0], [0, 0, 1, 0], [], []>} : vector<16x32xbf16>, vector<16x32xbf16>, vector<16x16xf32> -> vector<16x16xf32>
    "tpu.trace_stop"() : () -> ()
    %46 = arith.addf %45, %13 : vector<16x16xf32>
    %cst_22 = arith.constant dense<0xFF800000> : vector<16xf32>
    %47 = vector.multi_reduction <maximumf>, %46, %cst_22 [1] : vector<16x16xf32> to vector<16xf32>
    %48 = vector.shape_cast %47 : vector<16xf32> to vector<16x1xf32>
    %49 = vector.broadcast %48 : vector<16x1xf32> to vector<16x16xf32>
    %50 = arith.subf %46, %49 : vector<16x16xf32>
    %51 = math.exp %50 : vector<16x16xf32>
    %cst_23 = arith.constant dense<0.000000e+00> : vector<16xf32>
    %52 = vector.multi_reduction <add>, %51, %cst_23 [1] : vector<16x16xf32> to vector<16xf32>
    %53 = vector.shape_cast %52 : vector<16xf32> to vector<16x1xf32>
    %54 = tpu.reciprocal %53 {approx = true} : vector<16x1xf32> -> vector<16x1xf32>
    %55 = vector.broadcast %54 : vector<16x1xf32> to vector<16x16xf32>
    %56 = arith.mulf %51, %55 : vector<16x16xf32>
    %57 = arith.truncf %56 : vector<16x16xf32> to vector<16x16xbf16>
    %58 = arith.truncf %42 : vector<16x32xf32> to vector<16x32xbf16>
    %cst_24 = arith.constant dense<0.000000e+00> : vector<16x32xf32>
    %59 = tpu.matmul %57, %58, %cst_24 {dimension_numbers = #tpu.dot_dimension_numbers<[1], [0], [0], [1], [0, 0, 1, 1], [], []>} : vector<16x16xbf16>, vector<16x32xbf16>, vector<16x32xf32> -> vector<16x32xf32>
    %c32 = arith.constant 32 : index
    %c0_25 = arith.constant 0 : index
    %60 = vector.load %arg4[%c32, %c0_25] : memref<64x64xbf16, #tpu.memory_space<vmem>>, vector<32x64xbf16>
    %61 = arith.truncf %59 : vector<16x32xf32> to vector<16x32xbf16>
    %cst_26 = arith.constant dense<0.000000e+00> : vector<16x64xf32>
    %62 = tpu.matmul %61, %60, %cst_26 {dimension_numbers = #tpu.dot_dimension_numbers<[1], [0], [0], [1], [0, 0, 1, 1], [], []>} : vector<16x32xbf16>, vector<32x64xbf16>, vector<16x64xf32> -> vector<16x64xf32>
    %63 = arith.addf %39, %62 : vector<16x64xf32>
    %64 = arith.addf %6, %63 : vector<16x64xf32>
    %c2 = arith.constant 2 : index
    %c0_27 = arith.constant 0 : index
    %65 = vector.load %arg11[%c2, %c0_27] : memref<9x64xf32, #tpu.memory_space<vmem>>, vector<1x64xf32>
    %c3 = arith.constant 3 : index
    %c0_28 = arith.constant 0 : index
    %66 = vector.load %arg11[%c3, %c0_28] : memref<9x64xf32, #tpu.memory_space<vmem>>, vector<1x64xf32>
    %cst_29 = arith.constant dense<0.000000e+00> : vector<16xf32>
    %67 = vector.multi_reduction <add>, %64, %cst_29 [1] : vector<16x64xf32> to vector<16xf32>
    %68 = vector.shape_cast %67 : vector<16xf32> to vector<16x1xf32>
    %cst_30 = arith.constant 6.400000e+01 : f32
    %69 = vector.broadcast %cst_30 : f32 to vector<16x1xf32>
    %70 = arith.divf %68, %69 : vector<16x1xf32>
    %71 = vector.broadcast %70 : vector<16x1xf32> to vector<16x64xf32>
    %72 = arith.subf %64, %71 : vector<16x64xf32>
    %73 = arith.mulf %72, %72 : vector<16x64xf32>
    %cst_31 = arith.constant dense<0.000000e+00> : vector<16xf32>
    %74 = vector.multi_reduction <add>, %73, %cst_31 [1] : vector<16x64xf32> to vector<16xf32>
    %75 = vector.shape_cast %74 : vector<16xf32> to vector<16x1xf32>
    %cst_32 = arith.constant 6.400000e+01 : f32
    %76 = vector.broadcast %cst_32 : f32 to vector<16x1xf32>
    %77 = arith.divf %75, %76 : vector<16x1xf32>
    %78 = vector.broadcast %70 : vector<16x1xf32> to vector<16x64xf32>
    %79 = arith.subf %64, %78 : vector<16x64xf32>
    %cst_33 = arith.constant 9.99999974E-6 : f32
    %80 = vector.broadcast %cst_33 : f32 to vector<16x1xf32>
    %81 = arith.addf %77, %80 : vector<16x1xf32>
    %82 = math.rsqrt %81 : vector<16x1xf32>
    %83 = vector.broadcast %82 : vector<16x1xf32> to vector<16x64xf32>
    %84 = arith.mulf %79, %83 : vector<16x64xf32>
    %85 = vector.broadcast %65 : vector<1x64xf32> to vector<16x64xf32>
    %86 = arith.mulf %84, %85 : vector<16x64xf32>
    %87 = vector.broadcast %66 : vector<1x64xf32> to vector<16x64xf32>
    %88 = arith.addf %86, %87 : vector<16x64xf32>
    %c0_34 = arith.constant 0 : index
    %c0_35 = arith.constant 0 : index
    %89 = vector.load %arg5[%c0_34, %c0_35] : memref<64x64xbf16, #tpu.memory_space<vmem>>, vector<64x64xbf16>
    %90 = arith.truncf %88 : vector<16x64xf32> to vector<16x64xbf16>
    %cst_36 = arith.constant dense<0.000000e+00> : vector<16x64xf32>
    %91 = tpu.matmul %90, %89, %cst_36 {dimension_numbers = #tpu.dot_dimension_numbers<[1], [0], [0], [1], [0, 0, 1, 1], [], []>} : vector<16x64xbf16>, vector<64x64xbf16>, vector<16x64xf32> -> vector<16x64xf32>
    %c6 = arith.constant 6 : index
    %c0_37 = arith.constant 0 : index
    %92 = vector.load %arg11[%c6, %c0_37] : memref<9x64xf32, #tpu.memory_space<vmem>>, vector<1x64xf32>
    %93 = vector.broadcast %92 : vector<1x64xf32> to vector<16x64xf32>
    %94 = arith.addf %91, %93 : vector<16x64xf32>
    %cst_38 = arith.constant 0.000000e+00 : f32
    %95 = vector.broadcast %cst_38 : f32 to vector<16x64xf32>
    %96 = arith.maximumf %94, %95 : vector<16x64xf32>
    %c0_39 = arith.constant 0 : index
    %c0_40 = arith.constant 0 : index
    %97 = vector.load %arg6[%c0_39, %c0_40] : memref<64x64xbf16, #tpu.memory_space<vmem>>, vector<64x64xbf16>
    %98 = arith.truncf %96 : vector<16x64xf32> to vector<16x64xbf16>
    %cst_41 = arith.constant dense<0.000000e+00> : vector<16x64xf32>
    %99 = tpu.matmul %98, %97, %cst_41 {dimension_numbers = #tpu.dot_dimension_numbers<[1], [0], [0], [1], [0, 0, 1, 1], [], []>} : vector<16x64xbf16>, vector<64x64xbf16>, vector<16x64xf32> -> vector<16x64xf32>
    %c7 = arith.constant 7 : index
    %c0_42 = arith.constant 0 : index
    %100 = vector.load %arg11[%c7, %c0_42] : memref<9x64xf32, #tpu.memory_space<vmem>>, vector<1x64xf32>
    %101 = vector.broadcast %100 : vector<1x64xf32> to vector<16x64xf32>
    %102 = arith.addf %99, %101 : vector<16x64xf32>
    %103 = arith.addf %88, %102 : vector<16x64xf32>
    %c4 = arith.constant 4 : index
    %c0_43 = arith.constant 0 : index
    %104 = vector.load %arg11[%c4, %c0_43] : memref<9x64xf32, #tpu.memory_space<vmem>>, vector<1x64xf32>
    %c5 = arith.constant 5 : index
    %c0_44 = arith.constant 0 : index
    %105 = vector.load %arg11[%c5, %c0_44] : memref<9x64xf32, #tpu.memory_space<vmem>>, vector<1x64xf32>
    %cst_45 = arith.constant dense<0.000000e+00> : vector<16xf32>
    %106 = vector.multi_reduction <add>, %103, %cst_45 [1] : vector<16x64xf32> to vector<16xf32>
    %107 = vector.shape_cast %106 : vector<16xf32> to vector<16x1xf32>
    %cst_46 = arith.constant 6.400000e+01 : f32
    %108 = vector.broadcast %cst_46 : f32 to vector<16x1xf32>
    %109 = arith.divf %107, %108 : vector<16x1xf32>
    %110 = vector.broadcast %109 : vector<16x1xf32> to vector<16x64xf32>
    %111 = arith.subf %103, %110 : vector<16x64xf32>
    %112 = arith.mulf %111, %111 : vector<16x64xf32>
    %cst_47 = arith.constant dense<0.000000e+00> : vector<16xf32>
    %113 = vector.multi_reduction <add>, %112, %cst_47 [1] : vector<16x64xf32> to vector<16xf32>
    %114 = vector.shape_cast %113 : vector<16xf32> to vector<16x1xf32>
    %cst_48 = arith.constant 6.400000e+01 : f32
    %115 = vector.broadcast %cst_48 : f32 to vector<16x1xf32>
    %116 = arith.divf %114, %115 : vector<16x1xf32>
    %117 = vector.broadcast %109 : vector<16x1xf32> to vector<16x64xf32>
    %118 = arith.subf %103, %117 : vector<16x64xf32>
    %cst_49 = arith.constant 9.99999974E-6 : f32
    %119 = vector.broadcast %cst_49 : f32 to vector<16x1xf32>
    %120 = arith.addf %116, %119 : vector<16x1xf32>
    %121 = math.rsqrt %120 : vector<16x1xf32>
    %122 = vector.broadcast %121 : vector<16x1xf32> to vector<16x64xf32>
    %123 = arith.mulf %118, %122 : vector<16x64xf32>
    %124 = vector.broadcast %104 : vector<1x64xf32> to vector<16x64xf32>
    %125 = arith.mulf %123, %124 : vector<16x64xf32>
    %126 = vector.broadcast %105 : vector<1x64xf32> to vector<16x64xf32>
    %127 = arith.addf %125, %126 : vector<16x64xf32>
    %c0_50 = arith.constant 0 : index
    %c0_51 = arith.constant 0 : index
    %128 = vector.load %arg13[%c0_50, %c0_51] : memref<2x16xbf16, #tpu.memory_space<vmem>>, vector<2x16xbf16>
    %129 = arith.truncf %127 : vector<16x64xf32> to vector<16x64xbf16>
    %cst_52 = arith.constant dense<0.000000e+00> : vector<2x64xf32>
    %130 = tpu.matmul %128, %129, %cst_52 {dimension_numbers = #tpu.dot_dimension_numbers<[1], [0], [0], [1], [0, 0, 1, 1], [], []>} : vector<2x16xbf16>, vector<16x64xbf16>, vector<2x64xf32> -> vector<2x64xf32>
    %cst_53 = arith.constant 1.250000e-01 : f32
    %131 = vector.broadcast %cst_53 : f32 to vector<2x64xf32>
    %132 = arith.mulf %130, %131 : vector<2x64xf32>
    %c0_54 = arith.constant 0 : index
    %c0_55 = arith.constant 0 : index
    %133 = vector.load %arg7[%c0_54, %c0_55] : memref<64x64xbf16, #tpu.memory_space<vmem>>, vector<64x64xbf16>
    %134 = arith.truncf %132 : vector<2x64xf32> to vector<2x64xbf16>
    %cst_56 = arith.constant dense<0.000000e+00> : vector<2x64xf32>
    %135 = tpu.matmul %134, %133, %cst_56 {dimension_numbers = #tpu.dot_dimension_numbers<[1], [0], [0], [1], [0, 0, 1, 1], [], []>} : vector<2x64xbf16>, vector<64x64xbf16>, vector<2x64xf32> -> vector<2x64xf32>
    %c8 = arith.constant 8 : index
    %c0_57 = arith.constant 0 : index
    %136 = vector.load %arg11[%c8, %c0_57] : memref<9x64xf32, #tpu.memory_space<vmem>>, vector<1x64xf32>
    %137 = vector.broadcast %136 : vector<1x64xf32> to vector<2x64xf32>
    %138 = arith.addf %135, %137 : vector<2x64xf32>
    %cst_58 = arith.constant 0.000000e+00 : f32
    %139 = vector.broadcast %cst_58 : f32 to vector<2x64xf32>
    %140 = arith.maximumf %138, %139 : vector<2x64xf32>
    %c0_59 = arith.constant 0 : index
    %c0_60 = arith.constant 0 : index
    %141 = vector.load %arg8[%c0_59, %c0_60] : memref<64x128xbf16, #tpu.memory_space<vmem>>, vector<64x128xbf16>
    %142 = arith.truncf %140 : vector<2x64xf32> to vector<2x64xbf16>
    %cst_61 = arith.constant dense<0.000000e+00> : vector<2x128xf32>
    %143 = tpu.matmul %142, %141, %cst_61 {dimension_numbers = #tpu.dot_dimension_numbers<[1], [0], [0], [1], [0, 0, 1, 1], [], []>} : vector<2x64xbf16>, vector<64x128xbf16>, vector<2x128xf32> -> vector<2x128xf32>
    %c0_62 = arith.constant 0 : index
    %c0_63 = arith.constant 0 : index
    %144 = vector.load %arg10[%c0_62, %c0_63] : memref<1x128xf32, #tpu.memory_space<vmem>>, vector<1x128xf32>
    %145 = vector.broadcast %144 : vector<1x128xf32> to vector<2x128xf32>
    %146 = arith.addf %143, %145 : vector<2x128xf32>
    %c0_64 = arith.constant 0 : index
    %c0_65 = arith.constant 0 : index
    %c0_66 = arith.constant 0 : index
    %147 = vector.load %arg14[%c0_64, %c0_65, %c0_66] : memref<1x2x128xf32, #tpu.memory_space<vmem>>, vector<1x2x128xf32>
    %148 = vector.shape_cast %147 : vector<1x2x128xf32> to vector<2x128xf32>
    %149 = vector.shape_cast %146 : vector<2x128xf32> to vector<1x2x128xf32>
    tpu.vector_store %arg14[%c0_64, %c0_65, %c0_66], %149 {strides = array<i32>} : memref<1x2x128xf32, #tpu.memory_space<vmem>>, vector<1x2x128xf32>,
    return
  }
  func.func @transform_0(%arg0: i32) -> (i32, i32, i32) {
    %c0_i32 = arith.constant 0 : i32
    %c0_i32_0 = arith.constant 0 : i32
    %c0_i32_1 = arith.constant 0 : i32
    return %arg0, %c0_i32, %c0_i32_0 : i32, i32, i32
  }
  func.func @transform_1(%arg0: i32) -> (i32, i32) {
    %c0_i32 = arith.constant 0 : i32
    %c0_i32_0 = arith.constant 0 : i32
    %c0_i32_1 = arith.constant 0 : i32
    return %c0_i32, %c0_i32_0 : i32, i32
  }
  func.func @transform_2(%arg0: i32) -> (i32, i32) {
    %c0_i32 = arith.constant 0 : i32
    %c0_i32_0 = arith.constant 0 : i32
    %c0_i32_1 = arith.constant 0 : i32
    return %c0_i32, %c0_i32_0 : i32, i32
  }
  func.func @transform_3(%arg0: i32) -> (i32, i32) {
    %c0_i32 = arith.constant 0 : i32
    %c0_i32_0 = arith.constant 0 : i32
    %c0_i32_1 = arith.constant 0 : i32
    return %c0_i32, %c0_i32_0 : i32, i32
  }
  func.func @transform_4(%arg0: i32) -> (i32, i32) {
    %c0_i32 = arith.constant 0 : i32
    %c0_i32_0 = arith.constant 0 : i32
    %c0_i32_1 = arith.constant 0 : i32
    return %c0_i32, %c0_i32_0 : i32, i32
  }
  func.func @transform_5(%arg0: i32) -> (i32, i32) {
    %c0_i32 = arith.constant 0 : i32
    %c0_i32_0 = arith.constant 0 : i32
    %c0_i32_1 = arith.constant 0 : i32
    return %c0_i32, %c0_i32_0 : i32, i32
  }
  func.func @transform_6(%arg0: i32) -> (i32, i32) {
    %c0_i32 = arith.constant 0 : i32
    %c0_i32_0 = arith.constant 0 : i32
    %c0_i32_1 = arith.constant 0 : i32
    return %c0_i32, %c0_i32_0 : i32, i32
  }
  func.func @transform_7(%arg0: i32) -> (i32, i32) {
    %c0_i32 = arith.constant 0 : i32
    %c0_i32_0 = arith.constant 0 : i32
    %c0_i32_1 = arith.constant 0 : i32
    return %c0_i32, %c0_i32_0 : i32, i32
  }
  func.func @transform_8(%arg0: i32) -> (i32, i32) {
    %c0_i32 = arith.constant 0 : i32
    %c0_i32_0 = arith.constant 0 : i32
    %c0_i32_1 = arith.constant 0 : i32
    return %c0_i32, %c0_i32_0 : i32, i32
  }
  func.func @transform_9(%arg0: i32) -> (i32, i32) {
    %c0_i32 = arith.constant 0 : i32
    %c0_i32_0 = arith.constant 0 : i32
    %c0_i32_1 = arith.constant 0 : i32
    return %c0_i32, %c0_i32_0 : i32, i32
  }
  func.func @transform_10(%arg0: i32) -> (i32, i32) {
    %c0_i32 = arith.constant 0 : i32
    %c0_i32_0 = arith.constant 0 : i32
    %c0_i32_1 = arith.constant 0 : i32
    return %c0_i32, %c0_i32_0 : i32, i32
  }
  func.func @transform_11(%arg0: i32) -> (i32, i32) {
    %c0_i32 = arith.constant 0 : i32
    %c0_i32_0 = arith.constant 0 : i32
    %c0_i32_1 = arith.constant 0 : i32
    return %c0_i32, %c0_i32_0 : i32, i32
  }
  func.func @transform_12(%arg0: i32) -> (i32, i32) {
    %c0_i32 = arith.constant 0 : i32
    %c0_i32_0 = arith.constant 0 : i32
    %c0_i32_1 = arith.constant 0 : i32
    return %c0_i32, %c0_i32_0 : i32, i32
  }
  func.func @transform_13(%arg0: i32) -> (i32, i32, i32) {
    %c0_i32 = arith.constant 0 : i32
    %c0_i32_0 = arith.constant 0 : i32
    %c0_i32_1 = arith.constant 0 : i32
    return %arg0, %c0_i32, %c0_i32_0 : i32, i32, i32
  }
}

</mosaic_0001>

<bundles_post_ra>
// kernel: tpu_custom_call.1
= control target key start
LH: loop header
LB: loop body
LE: loop exit
PB: predicated region body
PF: predicated region fallthrough
CT: control target
= control target key end

     0   :  { %18 = vsyncpa [#allocation3], 0  ;;  %s1997_s0 = inlined_call_operand.hbm [shape: bf16[2,8,16], index: 0, kind: input, shape index: {}]   ;;  %s1998_s1 = inlined_call_operand.hbm [shape: bf16[16,64], index: 1, kind: input, shape index: {}]   ;;  %s1999_s2 = inlined_call_operand.hbm [shape: bf16[64,192], index: 2, kind: input, shape index: {}]   ;;  %s2000_s3 = inlined_call_operand.hbm [shape: bf16[64,64], index: 3, kind: input, shape index: {}]   ;;  %s2001_s4 = inlined_call_operand.hbm [shape: bf16[64,64], index: 4, kind: input, shape index: {}]   ;;  %s2002_s5 = inlined_call_operand.hbm [shape: bf16[64,64], index: 5, kind: input, shape index: {}]   ;;  %s2003_s6 = inlined_call_operand.hbm [shape: bf16[64,64], index: 6, kind: input, shape index: {}]   ;;  %s2004_s7 = inlined_call_operand.hbm [shape: bf16[64,128], index: 7, kind: input, shape index: {}]   ;;  %s2005_s8 = inlined_call_operand.vmem [shape: f32[1,192], index: 8, kind: input, shape index: {}]   ;;  %s2006_s9 = inlined_call_operand.hbm [shape: f32[1,128], index: 9, kind: input, shape index: {}]   ;;  %s2007_s10 = inlined_call_operand.vmem [shape: f32[9,64], index: 10, kind: input, shape index: {}]   ;;  %s2008_s11 = inlined_call_operand.hbm [shape: f32[16,16], index: 11, kind: input, shape index: {}]   ;;  %s2009_s12 = inlined_call_operand.vmem [shape: bf16[2,16], index: 12, kind: input, shape index: {}]   ;;  %s2010_s13 = inlined_call_operand.hbm [shape: f32[1,2,128], index: 13, kind: output, shape index: {}]  }
   0x1   :  { %19 = vsyncpa [#allocation6], 0 }
   0x2   :  { %20 = vsyncpa [#allocation9], 0 }
   0x3   :  { %21 = vsyncpa [#allocation12], 0 }
   0x4   :  { %22 = vsyncpa [#allocation15], 0 }
   0x5   :  { %23 = vsyncpa [#allocation18], 0 }
   0x6   :  { %24 = vsyncpa [#allocation4], 0  ;;  %s1714_s25 = smov [#allocation5]   ;;  %s1715_s27 = smov [#allocation8]  }
   0x7   :  { %s42_s26 = sshll.u32 %s1714_s25, 4  ;;  %s66_s28 = sshll.u32 %s1715_s27, 4  ;;  %s43_s26 = int_to_ptr.vmem [resolvable:$true] %s42_s26  ;;  %s67_s28 = int_to_ptr.vmem [resolvable:$true] %s66_s28 }
   0x8   :  { %s1488_s29 = scalar_lea.vmem %s43_s26, 128  ;;  %p1493_p1 = scmp.lt.s32.totalorder %s43_s26, %s43_s26 }
   0x9   :  { %p1489_p0 = scmp.ne.s32.totalorder %s43_s26, %s1488_s29  ;;  %p1494_p2 = scmp.lt.s32.totalorder %s1488_s29, %s1488_s29 }
   0xb   :  { %p1495_p3 = por %p1494_p2, %p1493_p1 }
   0xd   :  { %p1496_p4 = pnand %p1495_p3, %p1489_p0 }
   0xf   :  { %1499 = shalt.err (!%p1496_p4)
}
  0x10   :  { %s1716_s30 = smov 64   ;;  %s1717_s14 = smov 4  }
  0x11   :  { %48 = dma.hbm_to_vmem [thread:$0]  %s1998_s1, 128, %s43_s26, [#allocation6], %s1716_s30, %s1716_s30, %s1717_s14  }
  0x12   :  { %s1508_s17 = scalar_lea.vmem %s67_s28, 512  ;;  %p1513_p6 = scmp.lt.s32.totalorder %s67_s28, %s67_s28 }
  0x13   :  { %p1509_p5 = scmp.ne.s32.totalorder %s67_s28, %s1508_s17  ;;  %p1514_p7 = scmp.lt.s32.totalorder %s1508_s17, %s1508_s17 }
  0x15   :  { %p1515_p8 = por %p1514_p7, %p1513_p6 }
  0x17   :  { %p1516_p9 = pnand %p1515_p8, %p1509_p5 }
  0x19   :  { %1519 = shalt.err (!%p1516_p9)
}
  0x1a   :  { %72 = dma.hbm_to_vmem [thread:$0]  %s2000_s3, 512, %s67_s28, [#allocation9], %s1716_s30, %s1716_s30, %s1717_s14  }
  0x1b   :  { %s1718_s20 = smov [#allocation11]   ;;  %s1719_s22 = smov [#allocation14]  }
  0x1c   :  { %s90_s21 = sshll.u32 %s1718_s20, 4  ;;  %s114_s23 = sshll.u32 %s1719_s22, 4  ;;  %s91_s21 = int_to_ptr.vmem [resolvable:$true] %s90_s21  ;;  %s115_s23 = int_to_ptr.vmem [resolvable:$true] %s114_s23 }
  0x1d   :  { %s1528_s1 = scalar_lea.vmem %s91_s21, 512  ;;  %p1533_p11 = scmp.lt.s32.totalorder %s91_s21, %s91_s21 }
  0x1e   :  { %p1529_p10 = scmp.ne.s32.totalorder %s91_s21, %s1528_s1  ;;  %p1534_p12 = scmp.lt.s32.totalorder %s1528_s1, %s1528_s1 }
  0x20   :  { %p1535_p13 = por %p1534_p12, %p1533_p11 }
  0x22   :  { %p1536_p0 = pnand %p1535_p13, %p1529_p10 }
  0x24   :  { %1539 = shalt.err (!%p1536_p0)
}
  0x25   :  { %96 = dma.hbm_to_vmem [thread:$0]  %s2002_s5, 512, %s91_s21, [#allocation12], %s1716_s30, %s1716_s30, %s1717_s14  }
  0x26   :  { %s1548_s3 = scalar_lea.vmem %s115_s23, 512  ;;  %p1553_p2 = scmp.lt.s32.totalorder %s115_s23, %s115_s23 }
  0x27   :  { %p1549_p1 = scmp.ne.s32.totalorder %s115_s23, %s1548_s3  ;;  %p1554_p3 = scmp.lt.s32.totalorder %s1548_s3, %s1548_s3 }
  0x29   :  { %p1555_p4 = por %p1554_p3, %p1553_p2 }
  0x2b   :  { %p1556_p5 = pnand %p1555_p4, %p1549_p1 }
  0x2d   :  { %1559 = shalt.err (!%p1556_p5)
}
  0x2e   :  { %120 = dma.hbm_to_vmem [thread:$0]  %s2004_s7, 512, %s115_s23, [#allocation15], %s1716_s30, %s1716_s30, %s1717_s14  }
  0x2f   :  { %s1720_s28 = smov [#allocation2]   ;;  %s1721_s15 = smov [#allocation7]  }
  0x30   :  { %s30_s29 = sshll.u32 %s1720_s28, 4  ;;  %s54_s16 = sshll.u32 %s1721_s15, 4  ;;  %s31_s29 = int_to_ptr.vmem [resolvable:$true] %s30_s29  ;;  %s55_s16 = int_to_ptr.vmem [resolvable:$true] %s54_s16 }
  0x31   :  { %s1568_s5 = scalar_lea.vmem %s31_s29, 128  ;;  %p1573_p7 = scmp.lt.s32.totalorder %s31_s29, %s31_s29 }
  0x32   :  { %p1569_p6 = scmp.ne.s32.totalorder %s31_s29, %s1568_s5  ;;  %p1574_p8 = scmp.lt.s32.totalorder %s1568_s5, %s1568_s5 }
  0x34   :  { %p1575_p9 = por %p1574_p8, %p1573_p7 }
  0x36   :  { %p1576_p10 = pnand %p1575_p9, %p1569_p6 }
  0x38   :  { %1579 = shalt.err (!%p1576_p10)
}
  0x39   :  { %36 = dma.hbm_to_vmem [thread:$0]  %s1997_s0, 128, %s31_s29, [#allocation3], %s1716_s30, %s1716_s30, %s1717_s14  }
  0x3a   :  { %s1588_s7 = scalar_lea.vmem %s55_s16, 1024  ;;  %p1593_p12 = scmp.lt.s32.totalorder %s55_s16, %s55_s16 }
  0x3b   :  { %p1589_p11 = scmp.ne.s32.totalorder %s55_s16, %s1588_s7  ;;  %p1594_p13 = scmp.lt.s32.totalorder %s1588_s7, %s1588_s7 }
  0x3d   :  { %p1595_p0 = por %p1594_p13, %p1593_p12 }
  0x3f   :  { %p1596_p1 = pnand %p1595_p0, %p1589_p11 }
  0x41   :  { %1599 = shalt.err (!%p1596_p1)
}
  0x42   :  { %s1722_s19 = smov 128   ;;  %s1723_s20 = smov 8  }
  0x43   :  { %60 = dma.hbm_to_vmem [thread:$0]  %s1999_s2, 1024, %s55_s16, [#allocation6], %s1722_s19, %s1722_s19, %s1723_s20  }
  0x44   :  { %s1724_s23 = smov [#allocation10]   ;;  %s1725_s24 = smov [#allocation13]  }
  0x45   :  { %s78_s1 = sshll.u32 %s1724_s23, 4  ;;  %s102_s0 = sshll.u32 %s1725_s24, 4  ;;  %s79_s1 = int_to_ptr.vmem [resolvable:$true] %s78_s1  ;;  %s103_s0 = int_to_ptr.vmem [resolvable:$true] %s102_s0 }
  0x46   :  { %s1608_s25 = scalar_lea.vmem %s79_s1, 512  ;;  %p1613_p3 = scmp.lt.s32.totalorder %s79_s1, %s79_s1 }
  0x47   :  { %p1609_p2 = scmp.ne.s32.totalorder %s79_s1, %s1608_s25  ;;  %p1614_p4 = scmp.lt.s32.totalorder %s1608_s25, %s1608_s25 }
  0x49   :  { %p1615_p5 = por %p1614_p4, %p1613_p3 }
  0x4b   :  { %p1616_p6 = pnand %p1615_p5, %p1609_p2 }
  0x4d   :  { %1619 = shalt.err (!%p1616_p6)
}
  0x4e   :  { %84 = dma.hbm_to_vmem [thread:$0]  %s2001_s4, 512, %s79_s1, [#allocation9], %s1716_s30, %s1716_s30, %s1717_s14  }
  0x4f   :  { %s1628_s2 = scalar_lea.vmem %s103_s0, 512  ;;  %p1633_p8 = scmp.lt.s32.totalorder %s103_s0, %s103_s0 }
  0x50   :  { %p1629_p7 = scmp.ne.s32.totalorder %s103_s0, %s1628_s2  ;;  %p1634_p9 = scmp.lt.s32.totalorder %s1628_s2, %s1628_s2 }
  0x52   :  { %p1635_p10 = por %p1634_p9, %p1633_p8 }
  0x54   :  { %p1636_p11 = pnand %p1635_p10, %p1629_p7 }
  0x56   :  { %1639 = shalt.err (!%p1636_p11)
}
  0x57   :  { %108 = dma.hbm_to_vmem [thread:$0]  %s2003_s6, 512, %s103_s0, [#allocation12], %s1716_s30, %s1716_s30, %s1717_s14  }
  0x58   :  { %s1726_s29 = smov [#allocation16]   ;;  %s1727_s16 = smov [#allocation17]  }
  0x59   :  { %s129_s15 = sshll.u32 %s1726_s29, 4  ;;  %s140_s5 = sshll.u32 %s1727_s16, 4  ;;  %s130_s15 = int_to_ptr.vmem [resolvable:$true] %s129_s15  ;;  %s141_s5 = int_to_ptr.vmem [resolvable:$true] %s140_s5 }
  0x5a   :  { %s1648_s4 = scalar_lea.vmem %s130_s15, 16  ;;  %s1652_s17 = scalar_lea.vmem %s130_s15, 32 }
  0x5b   :  { %p1649_p12 = scmp.ne.s32.totalorder %s130_s15, %s1648_s4  ;;  %p1653_p13 = scmp.lt.s32.totalorder %s130_s15, %s130_s15 }
  0x5c   :  { %p1654_p0 = scmp.lt.s32.totalorder %s1652_s17, %s1648_s4 }
  0x5e   :  { %p1655_p1 = por %p1654_p0, %p1653_p13 }
  0x60   :  { %p1656_p2 = pnand %p1655_p1, %p1649_p12 }
  0x62   :  { %1659 = shalt.err (!%p1656_p2)
}
  0x63   :  { %132 = dma.hbm_to_vmem [thread:$0]  %s2006_s9, 16, %s130_s15, [#allocation15]  }
  0x64   :  { %s1668_s21 = scalar_lea.vmem %s141_s5, 256  ;;  %p1673_p4 = scmp.lt.s32.totalorder %s141_s5, %s141_s5 }
  0x65   :  { %p1669_p3 = scmp.ne.s32.totalorder %s141_s5, %s1668_s21  ;;  %p1674_p5 = scmp.lt.s32.totalorder %s1668_s21, %s1668_s21 }
  0x67   :  { %p1675_p6 = por %p1674_p5, %p1673_p4 }
  0x69   :  { %p1676_p7 = pnand %p1675_p6, %p1669_p3 }
  0x6b   :  { %1679 = shalt.err (!%p1676_p7)
}
  0x6c   :  { %146 = dma.hbm_to_vmem [thread:$0]  %s2008_s11, 256, %s141_s5, [#allocation18], %s1722_s19, %s1722_s19, %s1723_s20  }
  0x6d   :  { %1700 = dma.done.wait [#allocation3], 128  }
  0x6e   :  { %1701 = vsyncadd [#allocation3], 4294967168 }
  0x6f   :  { %1702 = dma.done.wait [#allocation6], 1152  }
  0x70   :  { %1703 = vsyncadd [#allocation6], 4294966144 }
  0x71   :  { %1704 = dma.done.wait [#allocation9], 1024  }
  0x72   :  { %1705 = vsyncadd [#allocation9], 4294966272 }
  0x73   :  { %1706 = dma.done.wait [#allocation12], 1024  }
  0x74   :  { %1707 = vsyncadd [#allocation12], 4294966272 }
  0x75   :  { %1708 = dma.done.wait [#allocation15], 528  }
  0x76   :  { %1709 = vsyncadd [#allocation15], 4294966768 }
  0x77   :  { %1710 = dma.done.wait [#allocation18], 256  }
  0x78   :  { %1711 = vsyncadd [#allocation18], 4294967040  ;;  %v1728_v0 = vmov 0.0   ;;  %vm1729_vm0 = vmmov 0   ;;  %v1422_v1 = vld [vmem:[#allocation5] sm:$0xff]   ;;  %v1423_v2 = vld [vmem:[#allocation2] sm:$0xff]   ;;  %v256_v20 = vlaneseq }
  0x79   :  { %1302 = vmatprep.subr.bf16.mxu0 %v1728_v0  ;;  %1304 = vmatprep.mubr.msk.bf16.mxu0 %vm1729_vm0, %v1728_v0  ;;  %vm200_vm1 = vcmask 130048   ;;  %v1424_v3 = vld [vmem:[#allocation7 + $0x34] ss:$8 sps:$4 sm:$0xff]   ;;  %v1426_v4 = vld [vmem:[#allocation7 + $0x30] ss:$8 sps:$4 sm:$0xff]   ;;  %v1730_v11 = vmov 0  }
  0x7a   :  { %1303 = vmatpush3.bf16.msra.mxu0 %v1422_v1  ;;  %318 = vmatprep.subr.bf16.mxu1 %v1424_v3  ;;  %v1427_v5 = vld [vmem:[#allocation7 + $0x24] ss:$8 sps:$4 sm:$0xff]   ;;  %v1429_v6 = vld [vmem:[#allocation7 + $0x20] ss:$8 sps:$4 sm:$0xff]   ;;  %v1430_v7 = vld [vmem:[#allocation7 + $0x14] ss:$8 sps:$4 sm:$0xff]  }
  0x7b   :  { %1308 = vmatprep.subr.bf16.mxu0 %v1728_v0  ;;  %319 = vmatpush1.bf16.msra.mxu1 %v1426_v4  ;;  %v1432_v8 = vld [vmem:[#allocation7 + $0x10] ss:$8 sps:$4 sm:$0xff]   ;;  %v1433_v9 = vld [vmem:[#allocation7 + $0x4] ss:$8 sps:$4 sm:$0xff]   ;;  %v1435_v10 = vld [vmem:[#allocation7] ss:$8 sps:$4 sm:$0xff]  }
  0x7c   :  { %320 = vmatprep.subr.bf16.mxu1 %v1427_v5  ;;  %342 = vmatprep.mubr.bf16.mxu1 %v1730_v11  ;;  %v1211_v13 = vld [vmem:[%s2007_s10] ss:$0 sm:$0xff]  ;;  %vm306_vm2 = vcmask 523264   ;;  %v257_v21 = vshrl.u32 %v256_v20, 7  ;;  %vm360_vm3 = vcmask 261120   ;;  %v353_v39 = vld [vmem:[#allocation17] sm:$0xff] }
  0x7d   :  { %1305 = vmatmul.mubr.msk.bf16.vlgmr.msra.gmra.mxu0 %vm200_vm1, %v1423_v2  ;;  %v254_v23 = vld [vmem:[%s2005_s8] sm:$0x3]  ;;  %s1731_s8 = smov 32   ;;  %s1733_s18 = smov [#allocation19]  }
  0x7e   :  { %1310 = vmatprep.mubr.msk.bf16.mxu0 %vm1729_vm0, %v1728_v0  ;;  %v258_v22 = vsub.s32 0, %v257_v21  ;;  %v262_v31 = vsub.s32 1, %v257_v21  ;;  %v1894_v43 = vld [vmem:[#allocation17 + $0x8] sm:$0xff]  ;;  %s1197_s7 = sshll.u32 %s1733_s18, 4  ;;  %s1198_s7 = int_to_ptr.vmem [resolvable:$true] %s1197_s7 }
  0x7f   :  { %321 = vmatpush1.bf16.msra.mxu1 %v1429_v6  ;;  %v1436_v6 = vld [vmem:[#allocation8 + $0x8] sm:$0xff]   ;;  %s1680_s21 = scalar_lea.vmem %s1198_s7, 32  ;;  %p1685_p9 = scmp.lt.s32.totalorder %s1198_s7, %s1198_s7 }
  0x80   :  { %322 = vmatprep.subr.bf16.mxu1 %v1430_v7  ;;  %v259_v25 = vrot.slane %v254_v23, %v258_v22  ;;  %v263_v35 = vrot.slane %v254_v23, %v262_v31  ;;  %v1437_v7 = vld [vmem:[#allocation8] sm:$0xff]   ;;  %p1681_p8 = scmp.ne.s32.totalorder %s1198_s7, %s1680_s21  ;;  %p1686_p10 = scmp.lt.s32.totalorder %s1680_s21, %s1680_s21 }
  0x82   :  { %p1687_p11 = por %p1686_p10, %p1685_p9 }
  0x83   :  { %323 = vmatpush1.bf16.msra.mxu1 %v1432_v8 }
  0x84   :  { %324 = vmatprep.subr.bf16.mxu1 %v1433_v9  ;;  %p1688_p12 = pnand %p1687_p11, %p1681_p8 }
  0x87   :  { %325 = vmatpush1.bf16.msra.mxu1 %v1435_v10 }
  0x88   :  { %1320 = vmatprep.subr.bf16.mxu1 %v1728_v0 }
 0x13d   :  { %v238_v12 = vpop.f32.mrf.mxu0 }
 0x13e   :  { %v1872_v16 = vadd.f32 %v1211_v13, %v238_v12 }
 0x13f   :  { %v1306_v14 = vpop.f32.mrf.mxu0 }
 0x141   :  { %v241_v15 = vpop.f32.mrf.mxu0 }
 0x142   :  { %v1874_v17 = vadd.f32 %v1211_v13, %v241_v15 }
 0x143   :  { %v1307_v18 = vpop.f32.mrf.mxu0 }
 0x144   :  { %v253_v19 = vpack.c.bf16 %v1874_v17, %v1872_v16 }
 0x146   :  { %1223 = vmatmul.mubr.msk.bf16.vlgmr.msra.gmra.mxu1 %vm306_vm2, %v253_v19 }
 0x147   :  { %1324 = vmatprep.mubr.msk.bf16.mxu1 %vm1729_vm0, %v1728_v0  ;;  %1321 = vmatpush3.bf16.msra.mxu1 %v1436_v6 }
 0x148   :  { %1322 = vmatprep.subr.bf16.mxu1 %v1728_v0 }
 0x14b   :  { %1323 = vmatpush3.bf16.msra.mxu1 %v1437_v7 }
 0x14c   :  { %1334 = vmatprep.subr.bf16.mxu1 %v1728_v0 }
 0x206   :  { %v344_v24 = vpop.f32.mrf.mxu1 }
 0x207   :  { %v345_v28 = vadd.f32 %v344_v24, %v259_v25 }
 0x208   :  { %v346_v26 = vpop.f32.mrf.mxu1 }
 0x209   :  { %v347_v37 = vadd.f32 %v346_v26, %v263_v35 }
 0x20a   :  { %v348_v27 = vpop.f32.mrf.mxu1 }
 0x20b   :  { %v349_v29 = vadd.f32 %v348_v27, %v259_v25 }
 0x20c   :  { %v350_v33 = vpop.f32.mrf.mxu1 }
 0x20d   :  { %v356_v30 = vpack.c.bf16 %v349_v29, %v345_v28  ;;  %v351_v36 = vadd.f32 %v350_v33, %v263_v35 }
 0x20f   :  { %358 = vrot.lane.b32.xlu0 %v356_v30, %s1716_s30  ;;  %v1887_v38 = vpack.c.bf16 %v351_v36, %v347_v37  ;;  %s1732_s30 = smov 96  }
 0x281   :  { %v359_v32 = vpop.permute.xlu0 %358 }
 0x282   :  { %v365_v34 = vsel %vm360_vm3, %v359_v32, 0 }
 0x283   :  { %1309 = vmatpush3.bf16.xpose.msra.mxu0 %v365_v34 }
 0x284   :  { %1314 = vmatprep.subr.bf16.mxu0 %v1728_v0 }
 0x28a   :  { %1311 = vmatmul.mubr.msk.bf16.vlgmr.msra.gmra.mxu0 %vm360_vm3, %v356_v30 }
 0x28b   :  { %1315 = vmatpush3.bf16.msra.mxu0 %v1887_v38  ;;  %1316 = vmatprep.mubr.msk.bf16.mxu0 %vm1729_vm0, %v1728_v0 }
 0x28c   :  { %1328 = vmatprep.subr.bf16.mxu0 %v1728_v0 }
 0x34a   :  { %v401_v40 = vpop.f32.mrf.mxu0 }
 0x34b   :  { %v402_v41 = vadd.f32 %v401_v40, %v353_v39 }
 0x34c   :  { %v1312_v42 = vpop.f32.mrf.mxu0 }
 0x34d   :  { %v408_v44 = vsel %vm200_vm1, %v402_v41, -inf }
 0x34e   :  { %409 = vmax.xlane.f32.xlu0 %v408_v44  ;;  %v404_v45 = vpop.f32.mrf.mxu0 }
 0x34f   :  { %v405_v46 = vadd.f32 %v404_v45, %v1894_v43 }
 0x350   :  { %v1313_v47 = vpop.f32.mrf.mxu0 }
 0x351   :  { %v411_v48 = vsel %vm200_vm1, %v405_v46, -inf }
 0x352   :  { %412 = vmax.xlane.f32.xlu1 %v411_v48 }
 0x3d7   :  { %v410_v49 = vpop.xlane.xlu0 %409 }
 0x3d8   :  { %v414_v50 = vsub.f32 %v402_v41, %v410_v49 }
 0x3da   :  { %v416_v51 = vmul.f32 1.442695, %v414_v50 }
 0x3db   :  { %v413_v52 = vpop.xlane.xlu1 %412 }
 0x3dc   :  { %1456 = vpow2.f32 %v416_v51  ;;  %v415_v53 = vsub.f32 %v405_v46, %v413_v52  ;;  %v1439_v46 = vld [vmem:[#allocation8 + $0x10] sm:$0xff]  }
 0x3dd   :  { %v1229_v52 = vld [vmem:[%s2007_s10 + $0x1] ss:$0 sm:$0xff] }
 0x3de   :  { %v418_v54 = vmul.f32 1.442695, %v415_v53 }
 0x3e0   :  { %1458 = vpow2.f32 %v418_v54 }
 0x3e9   :  { %v1457_v55 = vpop.eup %1456 }
 0x3ea   :  { %v420_v56 = vsel %vm200_vm1, %v1457_v55, 0.0 }
 0x3eb   :  { %421 = vadd.xlane.f32.xlu1 %v420_v56 }
 0x3ed   :  { %v1459_v57 = vpop.eup %1458 }
 0x3ee   :  { %v423_v58 = vsel %vm200_vm1, %v1459_v57, 0.0 }
 0x3ef   :  { %424 = vadd.xlane.f32.xlu1 %v423_v58 }
 0x400   :  { %545 = vrot.lane.b32.xlu1 %v356_v30, %s1731_s8 }
 0x404   :  { %543 = vrot.lane.b32.xlu1 %v356_v30, %s1732_s30 }
 0x474   :  { %v422_v59 = vpop.xlane.xlu1 %421 }
 0x475   :  { %1460 = vrcp.f32 %v422_v59 }
 0x478   :  { %v425_v60 = vpop.xlane.xlu1 %424 }
 0x479   :  { %1462 = vrcp.f32 %v425_v60 }
 0x47c   :  { %v546_v2 = vpop.permute.xlu1 %545 }
 0x47d   :  { %v551_v4 = vsel %vm360_vm3, %v546_v2, 0 }
 0x480   :  { %v544_v5 = vpop.permute.xlu1 %543 }
 0x482   :  { %v1461_v61 = vpop.eup %1460 }
 0x483   :  { %v428_v63 = vmul.f32 %v1461_v61, %v1457_v55 }
 0x486   :  { %v1463_v62 = vpop.eup %1462 }
 0x487   :  { %v429_v1 = vmul.f32 %v1463_v62, %v1459_v57 }
 0x489   :  { %v430_v3 = vpack.c.bf16 %v429_v1, %v428_v63 }
 0x48b   :  { %1317 = vmatmul.mubr.msk.bf16.vlgmr.msra.gmra.mxu0 %vm200_vm1, %v430_v3 }
 0x48c   :  { %1329 = vmatpush3.bf16.xpose.msra.mxu0 %v551_v4  ;;  %1330 = vmatprep.mubr.msk.bf16.mxu0 %vm1729_vm0, %v1728_v0 }
 0x48d   :  { %1340 = vmatprep.subr.bf16.mxu0 %v1728_v0 }
 0x493   :  { %1331 = vmatmul.mubr.msk.bf16.vlgmr.msra.gmra.mxu0 %vm360_vm3, %v544_v5 }
 0x494   :  { %1344 = vmatprep.mubr.msk.bf16.mxu0 %vm1729_vm0, %v1728_v0 }
 0x54b   :  { %v469_v8 = vpop.f32.mrf.mxu0 }
 0x54d   :  { %v1318_v9 = vpop.f32.mrf.mxu0 }
 0x54f   :  { %v472_v10 = vpop.f32.mrf.mxu0 }
 0x550   :  { %v480_v11 = vpack.c.bf16 %v472_v10, %v469_v8 }
 0x551   :  { %v1319_v12 = vpop.f32.mrf.mxu0 }
 0x552   :  { %1325 = vmatmul.mubr.msk.bf16.vlgmr.msra.gmra.mxu1 %vm360_vm3, %v480_v11  ;;  %v1440_v11 = vld [vmem:[#allocation10 + $0x18] sm:$0xff]   ;;  %v1442_v12 = vld [vmem:[#allocation10 + $0x8] sm:$0xff]  }
 0x553   :  { %v587_v13 = vpop.f32.mrf.mxu0  ;;  %1336 = vmatprep.mubr.msk.bf16.mxu1 %vm1729_vm0, %v1728_v0 }
 0x554   :  { %v588_v14 = vadd.f32 %v587_v13, %v353_v39  ;;  %v1443_v13 = vld [vmem:[#allocation10] sm:$0xff]  }
 0x555   :  { %v1332_v15 = vpop.f32.mrf.mxu0 }
 0x556   :  { %v594_v18 = vsel %vm200_vm1, %v588_v14, -inf }
 0x557   :  { %595 = vmax.xlane.f32.xlu1 %v594_v18  ;;  %v590_v19 = vpop.f32.mrf.mxu0 }
 0x558   :  { %v591_v20 = vadd.f32 %v590_v19, %v1894_v43 }
 0x559   :  { %v1333_v21 = vpop.f32.mrf.mxu0 }
 0x55a   :  { %v597_v22 = vsel %vm200_vm1, %v591_v20, -inf }
 0x55b   :  { %598 = vmax.xlane.f32.xlu0 %v597_v22 }
 0x5e0   :  { %v596_v23 = vpop.xlane.xlu1 %595 }
 0x5e1   :  { %v600_v24 = vsub.f32 %v588_v14, %v596_v23  ;;  %v1444_v14 = vld [vmem:[#allocation11 + $0x18] sm:$0xff]  }
 0x5e3   :  { %v602_v25 = vmul.f32 1.442695, %v600_v24 }
 0x5e4   :  { %v599_v26 = vpop.xlane.xlu0 %598 }
 0x5e5   :  { %1464 = vpow2.f32 %v602_v25  ;;  %v601_v27 = vsub.f32 %v591_v20, %v599_v26  ;;  %v1235_v25 = vld [vmem:[%s2007_s10 + $0x2] ss:$0 sm:$0xff] }
 0x5e7   :  { %v604_v28 = vmul.f32 1.442695, %v601_v27 }
 0x5e9   :  { %1466 = vpow2.f32 %v604_v28 }
 0x5f2   :  { %v1465_v29 = vpop.eup %1464 }
 0x5f3   :  { %v606_v30 = vsel %vm200_vm1, %v1465_v29, 0.0 }
 0x5f4   :  { %607 = vadd.xlane.f32.xlu0 %v606_v30 }
 0x5f6   :  { %v1467_v31 = vpop.eup %1466 }
 0x5f7   :  { %v609_v32 = vsel %vm200_vm1, %v1467_v31, 0.0 }
 0x5f8   :  { %610 = vadd.xlane.f32.xlu0 %v609_v32 }
 0x60e   :  { %618 = vrot.lane.b32.xlu0 %v1887_v38, %s1732_s30  ;;  %v1438_v38 = vld [vmem:[#allocation8 + $0x18] sm:$0xff]  }
 0x60f   :  { %1341 = vmatpush3.bf16.msra.mxu0 %v1438_v38 }
 0x610   :  { %1342 = vmatprep.subr.bf16.mxu0 %v1728_v0 }
 0x612   :  { %v530_v33 = vpop.f32.mrf.mxu1 }
 0x613   :  { %1343 = vmatpush3.bf16.msra.mxu0 %v1439_v46  ;;  %v541_v53 = vadd.f32 %v1229_v52, %v530_v33 }
 0x614   :  { %v1326_v34 = vpop.f32.mrf.mxu1  ;;  %1360 = vmatprep.subr.bf16.mxu0 %v1728_v0 }
 0x615   :  { %v1445_v34 = vld [vmem:[#allocation11 + $0x10] sm:$0xff]  }
 0x616   :  { %v533_v35 = vpop.f32.mrf.mxu1 }
 0x617   :  { %v542_v57 = vadd.f32 %v1229_v52, %v533_v35  ;;  %v1446_v35 = vld [vmem:[#allocation11 + $0x8] sm:$0xff]  }
 0x618   :  { %v1327_v36 = vpop.f32.mrf.mxu1 }
 0x619   :  { %v1447_v36 = vld [vmem:[#allocation11] sm:$0xff]  }
 0x67d   :  { %v608_v37 = vpop.xlane.xlu0 %607 }
 0x67e   :  { %1468 = vrcp.f32 %v608_v37  ;;  %v1237_v37 = vld [vmem:[%s2007_s10 + $0x6] ss:$0 sm:$0xff] }
 0x681   :  { %v611_v39 = vpop.xlane.xlu0 %610 }
 0x682   :  { %1470 = vrcp.f32 %v611_v39 }
 0x685   :  { %v619_v40 = vpop.permute.xlu0 %618 }
 0x686   :  { %1335 = vmatpush3.bf16.msra.mxu1 %v619_v40 }
 0x687   :  { %1348 = vmatprep.subr.bf16.mxu1 %v1728_v0 }
 0x68b   :  { %v1469_v41 = vpop.eup %1468 }
 0x68c   :  { %v614_v43 = vmul.f32 %v1469_v41, %v1465_v29  ;;  %v1236_v29 = vld [vmem:[%s2007_s10 + $0x3] ss:$0 sm:$0xff] }
 0x68f   :  { %v1471_v42 = vpop.eup %1470 }
 0x690   :  { %v615_v44 = vmul.f32 %v1471_v42, %v1467_v31 }
 0x692   :  { %v616_v45 = vpack.c.bf16 %v615_v44, %v614_v43 }
 0x694   :  { %1337 = vmatmul.mubr.msk.bf16.vlgmr.msra.gmra.mxu1 %vm200_vm1, %v616_v45 }
 0x695   :  { %1356 = vmatprep.mubr.msk.bf16.mxu1 %vm1729_vm0, %v1728_v0  ;;  %1349 = vmatpush3.bf16.msra.mxu1 %v1440_v11 }
 0x696   :  { %1350 = vmatprep.subr.bf16.mxu1 %v1728_v0 }
 0x754   :  { %v658_v47 = vpop.f32.mrf.mxu1 }
 0x756   :  { %v1338_v48 = vpop.f32.mrf.mxu1 }
 0x758   :  { %v661_v49 = vpop.f32.mrf.mxu1 }
 0x759   :  { %v669_v50 = vpack.c.bf16 %v661_v49, %v658_v47  ;;  %v1243_v47 = vld [vmem:[%s2007_s10 + $0x7] ss:$0 sm:$0xff] }
 0x75a   :  { %v1339_v51 = vpop.f32.mrf.mxu1 }
 0x75b   :  { %1345 = vmatmul.mubr.msk.bf16.vlgmr.msra.gmra.mxu0 %vm360_vm3, %v669_v50 }
 0x75c   :  { %1368 = vmatprep.mubr.msk.bf16.mxu0 %vm1729_vm0, %v1728_v0  ;;  %1361 = vmatpush3.bf16.msra.mxu0 %v1444_v14  ;;  %v1249_v14 = vld [vmem:[%s2007_s10 + $0x4] ss:$0 sm:$0xff] }
 0x75d   :  { %1362 = vmatprep.subr.bf16.mxu0 %v1728_v0 }
 0x760   :  { %1363 = vmatpush3.bf16.msra.mxu0 %v1445_v34 }
 0x761   :  { %1364 = vmatprep.subr.bf16.mxu0 %v1728_v0 }
 0x764   :  { %1365 = vmatpush3.bf16.msra.mxu0 %v1446_v35  ;;  %v1454_v35 = vld [vmem:[#allocation14 + $0x8] sm:$0xff]  }
 0x765   :  { %1366 = vmatprep.subr.bf16.mxu0 %v1728_v0 }
 0x768   :  { %1367 = vmatpush3.bf16.msra.mxu0 %v1447_v36  ;;  %v1455_v36 = vld [vmem:[#allocation14] sm:$0xff]  }
 0x769   :  { %1378 = vmatprep.subr.bf16.mxu0 %v1728_v0 }
 0x81b   :  { %v719_v54 = vpop.f32.mrf.mxu0 }
 0x81c   :  { %v726_v55 = vadd.f32 %v719_v54, %v541_v53 }
 0x81d   :  { %v1346_v56 = vpop.f32.mrf.mxu0 }
 0x81e   :  { %v728_v58 = vadd.f32 %v726_v55, %v1872_v16 }
 0x81f   :  { %v722_v59 = vpop.f32.mrf.mxu0 }
 0x820   :  { %v727_v60 = vadd.f32 %v722_v59, %v542_v57  ;;  %v732_v61 = vsel %vm306_vm2, %v728_v58, 0.0 }
 0x821   :  { %733 = vadd.xlane.f32.xlu0 %v732_v61  ;;  %v1347_v62 = vpop.f32.mrf.mxu0 }
 0x822   :  { %v729_v63 = vadd.f32 %v727_v60, %v1874_v17  ;;  %v1441_v17 = vld [vmem:[#allocation10 + $0x10] sm:$0xff]  }
 0x823   :  { %1351 = vmatpush3.bf16.msra.mxu1 %v1441_v17 }
 0x824   :  { %v735_v1 = vsel %vm306_vm2, %v729_v63, 0.0  ;;  %1352 = vmatprep.subr.bf16.mxu1 %v1728_v0 }
 0x825   :  { %736 = vadd.xlane.f32.xlu1 %v735_v1 }
 0x827   :  { %1353 = vmatpush3.bf16.msra.mxu1 %v1442_v12 }
 0x828   :  { %1354 = vmatprep.subr.bf16.mxu1 %v1728_v0 }
 0x82b   :  { %1355 = vmatpush3.bf16.msra.mxu1 %v1443_v13 }
 0x82c   :  { %1372 = vmatprep.subr.bf16.mxu1 %v1728_v0 }
 0x8aa   :  { %v734_v2 = vpop.xlane.xlu0 %733 }
 0x8ab   :  { %v739_v3 = vmul.f32 0.015625, %v734_v2 }
 0x8ad   :  { %v741_v4 = vsub.f32 %v728_v58, %v739_v3 }
 0x8ae   :  { %v737_v5 = vpop.xlane.xlu1 %736 }
 0x8af   :  { %v740_v6 = vmul.f32 0.015625, %v737_v5  ;;  %v743_v7 = vmul.f32 %v741_v4, %v741_v4  ;;  %v1448_v5 = vld [vmem:[#allocation13 + $0x18] sm:$0xff]  }
 0x8b1   :  { %v742_v8 = vsub.f32 %v729_v63, %v740_v6  ;;  %v745_v16 = vsel %vm306_vm2, %v743_v7, 0.0  ;;  %v1449_v6 = vld [vmem:[#allocation13 + $0x10] sm:$0xff]   ;;  %v1450_v7 = vld [vmem:[#allocation13 + $0x8] sm:$0xff]  }
 0x8b2   :  { %746 = vadd.xlane.f32.xlu1 %v745_v16 }
 0x8b3   :  { %v744_v9 = vmul.f32 %v742_v8, %v742_v8 }
 0x8b5   :  { %v748_v10 = vsel %vm306_vm2, %v744_v9, 0.0 }
 0x8b6   :  { %749 = vadd.xlane.f32.xlu1 %v748_v10 }
 0x93b   :  { %v747_v15 = vpop.xlane.xlu1 %746 }
 0x93c   :  { %v751_v18 = vmul.f32 0.015625, %v747_v15 }
 0x93e   :  { %v753_v19 = vadd.f32 1e-05, %v751_v18 }
 0x93f   :  { %v750_v20 = vpop.xlane.xlu1 %749 }
 0x940   :  { %1472 = vrsqrt.f32 %v753_v19  ;;  %v752_v21 = vmul.f32 0.015625, %v750_v20  ;;  %v1250_v20 = vld [vmem:[%s2007_s10 + $0x5] ss:$0 sm:$0xff] }
 0x942   :  { %v754_v22 = vadd.f32 1e-05, %v752_v21 }
 0x944   :  { %1474 = vrsqrt.f32 %v754_v22 }
 0x94d   :  { %v1473_v23 = vpop.eup %1472 }
 0x94e   :  { %v757_v24 = vmul.f32 %v1473_v23, %v741_v4 }
 0x950   :  { %v763_v28 = vmul.f32 %v1235_v25, %v757_v24 }
 0x951   :  { %v1475_v26 = vpop.eup %1474 }
 0x952   :  { %v758_v27 = vmul.f32 %v1475_v26, %v742_v8  ;;  %v769_v31 = vadd.f32 %v1236_v29, %v763_v28  ;;  %v1451_v26 = vld [vmem:[#allocation13] sm:$0xff]   ;;  %v1453_v28 = vld [vmem:[#allocation14 + $0x10] sm:$0xff]  }
 0x954   :  { %v764_v30 = vmul.f32 %v1235_v25, %v758_v27  ;;  %v979_v25 = vld [vmem:[%s2009_s12] sm:$0x1]  ;;  %v1452_v27 = vld [vmem:[#allocation14 + $0x18] sm:$0xff]  }
 0x956   :  { %v770_v32 = vadd.f32 %v1236_v29, %v764_v30 }
 0x958   :  { %v779_v33 = vpack.c.bf16 %v770_v32, %v769_v31 }
 0x95a   :  { %1357 = vmatmul.mubr.msk.bf16.vlgmr.msra.gmra.mxu1 %vm306_vm2, %v779_v33 }
 0x95b   :  { %1374 = vmatprep.mubr.msk.bf16.mxu1 %vm1729_vm0, %v1728_v0 }
 0xa1a   :  { %v846_v39 = vpop.f32.mrf.mxu1 }
 0xa1b   :  { %v847_v41 = vadd.f32 %v1237_v37, %v846_v39 }
 0xa1c   :  { %v1358_v40 = vpop.f32.mrf.mxu1 }
 0xa1d   :  { %v853_v45 = vmax.f32 %v847_v41, 0.0 }
 0xa1e   :  { %v849_v42 = vpop.f32.mrf.mxu1 }
 0xa1f   :  { %v850_v43 = vadd.f32 %v1237_v37, %v849_v42  ;;  %v1252_v37 = vld [vmem:[%s2007_s10 + $0x8] ss:$0 sm:$0xff] }
 0xa20   :  { %v1359_v44 = vpop.f32.mrf.mxu1 }
 0xa21   :  { %v854_v38 = vmax.f32 %v850_v43, 0.0 }
 0xa23   :  { %v863_v46 = vpack.c.bf16 %v854_v38, %v853_v45  ;;  %v1258_v38 = vld [vmem:[#allocation16] ss:$0 sm:$0xff] }
 0xa25   :  { %1369 = vmatmul.mubr.msk.bf16.vlgmr.msra.gmra.mxu0 %vm306_vm2, %v863_v46 }
 0xa26   :  { %1386 = vmatprep.mubr.msk.bf16.mxu0 %vm1729_vm0, %v1728_v0  ;;  %1379 = vmatpush3.bf16.msra.mxu0 %v1448_v5 }
 0xa27   :  { %1380 = vmatprep.subr.bf16.mxu0 %v1728_v0 }
 0xa2a   :  { %1381 = vmatpush3.bf16.msra.mxu0 %v1449_v6 }
 0xa2b   :  { %1382 = vmatprep.subr.bf16.mxu0 %v1728_v0 }
 0xa2e   :  { %1383 = vmatpush3.bf16.msra.mxu0 %v1450_v7 }
 0xa2f   :  { %1384 = vmatprep.subr.bf16.mxu0 %v1728_v0 }
 0xa32   :  { %1385 = vmatpush3.bf16.msra.mxu0 %v1451_v26 }
 0xae5   :  { %v930_v48 = vpop.f32.mrf.mxu0 }
 0xae6   :  { %v931_v49 = vadd.f32 %v1243_v47, %v930_v48 }
 0xae7   :  { %v1370_v50 = vpop.f32.mrf.mxu0 }
 0xae8   :  { %v937_v51 = vadd.f32 %v931_v49, %v769_v31 }
 0xae9   :  { %v933_v52 = vpop.f32.mrf.mxu0 }
 0xaea   :  { %v934_v53 = vadd.f32 %v1243_v47, %v933_v52  ;;  %v941_v54 = vsel %vm306_vm2, %v937_v51, 0.0 }
 0xaeb   :  { %942 = vadd.xlane.f32.xlu1 %v941_v54  ;;  %v1371_v55 = vpop.f32.mrf.mxu0 }
 0xaec   :  { %v938_v56 = vadd.f32 %v934_v53, %v770_v32 }
 0xaee   :  { %v944_v57 = vsel %vm306_vm2, %v938_v56, 0.0 }
 0xaef   :  { %945 = vadd.xlane.f32.xlu1 %v944_v57 }
 0xb74   :  { %v943_v58 = vpop.xlane.xlu1 %942 }
 0xb75   :  { %v947_v59 = vmul.f32 0.015625, %v943_v58 }
 0xb77   :  { %v949_v60 = vsub.f32 %v937_v51, %v947_v59 }
 0xb78   :  { %v946_v61 = vpop.xlane.xlu1 %945 }
 0xb79   :  { %v948_v62 = vmul.f32 0.015625, %v946_v61  ;;  %v951_v63 = vmul.f32 %v949_v60, %v949_v60 }
 0xb7b   :  { %v950_v1 = vsub.f32 %v938_v56, %v948_v62  ;;  %v953_v2 = vsel %vm306_vm2, %v951_v63, 0.0 }
 0xb7c   :  { %954 = vadd.xlane.f32.xlu1 %v953_v2 }
 0xb7d   :  { %v952_v3 = vmul.f32 %v950_v1, %v950_v1 }
 0xb7f   :  { %v956_v4 = vsel %vm306_vm2, %v952_v3, 0.0 }
 0xb80   :  { %957 = vadd.xlane.f32.xlu1 %v956_v4 }
 0xc05   :  { %v955_v8 = vpop.xlane.xlu1 %954 }
 0xc06   :  { %v959_v16 = vmul.f32 0.015625, %v955_v8 }
 0xc08   :  { %v961_v9 = vadd.f32 1e-05, %v959_v16 }
 0xc09   :  { %v958_v10 = vpop.xlane.xlu1 %957 }
 0xc0a   :  { %1476 = vrsqrt.f32 %v961_v9  ;;  %v960_v11 = vmul.f32 0.015625, %v958_v10 }
 0xc0c   :  { %v962_v17 = vadd.f32 1e-05, %v960_v11 }
 0xc0e   :  { %1478 = vrsqrt.f32 %v962_v17 }
 0xc17   :  { %v1477_v12 = vpop.eup %1476 }
 0xc18   :  { %v965_v13 = vmul.f32 %v1477_v12, %v949_v60 }
 0xc1a   :  { %v971_v19 = vmul.f32 %v1249_v14, %v965_v13 }
 0xc1b   :  { %v1479_v15 = vpop.eup %1478 }
 0xc1c   :  { %v966_v18 = vmul.f32 %v1479_v15, %v950_v1  ;;  %v977_v22 = vadd.f32 %v1250_v20, %v971_v19 }
 0xc1e   :  { %v972_v21 = vmul.f32 %v1249_v14, %v966_v18 }
 0xc20   :  { %v978_v23 = vadd.f32 %v1250_v20, %v972_v21 }
 0xc22   :  { %v980_v24 = vpack.c.bf16 %v978_v23, %v977_v22 }
 0xc24   :  { %1373 = vmatpush3.bf16.msra.mxu1 %v980_v24 }
 0xc25   :  { %1390 = vmatprep.subr.bf16.mxu1 %v1728_v0 }
 0xc27   :  { %1375 = vmatmul.mubr.msk.bf16.vlgmr.msra.gmra.mxu1 %vm200_vm1, %v979_v25 }
 0xc28   :  { %1398 = vmatprep.mubr.msk.bf16.mxu1 %vm1729_vm0, %v1728_v0  ;;  %1391 = vmatpush3.bf16.msra.mxu1 %v1452_v27 }
 0xc29   :  { %1392 = vmatprep.subr.bf16.mxu1 %v1728_v0 }
 0xc2c   :  { %1393 = vmatpush3.bf16.msra.mxu1 %v1453_v28 }
 0xc2d   :  { %1394 = vmatprep.subr.bf16.mxu1 %v1728_v0 }
 0xc30   :  { %1395 = vmatpush3.bf16.msra.mxu1 %v1454_v35 }
 0xc31   :  { %1396 = vmatprep.subr.bf16.mxu1 %v1728_v0 }
 0xc34   :  { %1397 = vmatpush3.bf16.msra.mxu1 %v1455_v36 }
 0xce7   :  { %v1018_v29 = vpop.f32.mrf.mxu1 }
 0xce8   :  { %v1024_v30 = vmul.f32 0.125, %v1018_v29 }
 0xce9   :  { %v1376_v31 = vpop.f32.mrf.mxu1 }
 0xcea   :  { %v1033_v32 = vpack.c.bf16 %v1024_v30, %v1024_v30 }
 0xceb   :  { %v1021_v33 = vpop.f32.mrf.mxu1 }
 0xcec   :  { %1387 = vmatmul.mubr.msk.bf16.vlgmr.msra.gmra.mxu0 %vm306_vm2, %v1033_v32 }
 0xced   :  { %v1377_v34 = vpop.f32.mrf.mxu1 }
 0xdac   :  { %v1100_v39 = vpop.f32.mrf.mxu0 }
 0xdad   :  { %v1101_v40 = vadd.f32 %v1252_v37, %v1100_v39 }
 0xdae   :  { %v1388_v41 = vpop.f32.mrf.mxu0 }
 0xdaf   :  { %v1106_v42 = vmax.f32 %v1101_v40, 0.0 }
 0xdb0   :  { %v1103_v43 = vpop.f32.mrf.mxu0 }
 0xdb1   :  { %v1115_v44 = vpack.c.bf16 %v1106_v42, %v1106_v42 }
 0xdb2   :  { %v1389_v45 = vpop.f32.mrf.mxu0 }
 0xdb3   :  { %1399 = vmatmul.mubr.msk.bf16.vlgmr.msra.gmra.mxu1 %vm306_vm2, %v1115_v44 }
 0xe73   :  { %v1184_v46 = vpop.f32.mrf.mxu1 }
 0xe74   :  { %v1185_v0 = vadd.f32 %v1258_v38, %v1184_v46 }
 0xe75   :  { %v1400_v47 = vpop.f32.mrf.mxu1 }
 0xe76   :  { %1190 = vst [vmem:[#allocation19] sm:$0x3] %v1185_v0 }
 0xe77   :  { %v1187_v48 = vpop.f32.mrf.mxu1 }
 0xe78   :  { %1691 = shalt.err (!%p1688_p12)
}
 0xe79   :  { %1200 = dma.vmem_to_hbm [thread:$0]  %s1198_s7, 32, %s2010_s13, [#allocation4]   ;;  %v1401_v49 = vpop.f32.mrf.mxu1 }
 0xe7a   :  { %1712 = dma.done.wait [#allocation4], 32  }
 0xe7b   :  { %1713 = vsyncadd [#allocation4], 4294967264 }
 0xe7c   :  { %1204 = vsyncpa [#allocation3], 1 }
 0xe7d   :  { %1205 = vsyncpa [#allocation6], 1 }
 0xe7e   :  { %1206 = vsyncpa [#allocation9], 1 }
 0xe7f   :  { %1207 = vsyncpa [#allocation12], 1 }
 0xe80   :  { %1208 = vsyncpa [#allocation15], 1 }
 0xe81   :  { %1209 = vsyncpa [#allocation18], 1 }
 0xe82   :  { %1210 = vsyncpa [#allocation4], 1 }

</bundles_post_ra>
